<compile_context>
chip_gen: v5e
topology: v5e:2x2
jax: 0.10.0
libtpu: 0.0.40
codegen_flags: <defaults>
</compile_context>

<pallas_src>
import jax
import jax.numpy as jnp
from jax.experimental import pallas as pl
from jax.experimental.pallas import tpu as pltpu


# ----------------------------------------------------------------------------
# Fused ResBlock kernel: one zero-H-padded image per grid step.
# ----------------------------------------------------------------------------
def _resblock_kernel(xp_ref, w3_ref, b3_ref, w1_ref, b1_ref, o_ref):
    # xp_ref : (H+2, W*Cin)        raw x, zero-padded one row top/bottom (f32)
    # w3_ref : (3, W*Cin, W*Cmid)  banded 3x3 weights, one slab per ky (bf16)
    # b3_ref : (1, W*Cmid)         f32, b3 tiled over W
    # w1_ref : (W*Cmid, W*Cin)     block-diagonal 1x1 weights (bf16)
    # b1_ref : (1, W*Cin)          f32, b1 tiled over W
    # o_ref  : (H, W*Cin)
    hh = o_ref.shape[0]
    xp = xp_ref[...]                                        # single x stream
    a = jnp.maximum(xp, 0.0).astype(w3_ref.dtype)           # leading ReLU, once

    # 3x3 conv == three row-shifted matmuls; the kx taps and the W-boundary
    # zeros live inside the banded weight slabs.  h lane dim = W*Cmid (dense).
    h = jnp.dot(a[0:hh, :], w3_ref[0], preferred_element_type=jnp.float32)
    h = h + jnp.dot(a[1:hh + 1, :], w3_ref[1], preferred_element_type=jnp.float32)
    h = h + jnp.dot(a[2:hh + 2, :], w3_ref[2], preferred_element_type=jnp.float32)
    h = jnp.maximum(h + b3_ref[...], 0.0)                   # f32 epilogue (v5e-safe)

    # 1x1 conv as a block-diagonal matmul -> output lane dim = W*Cin (dense).
    y = jnp.dot(h.astype(w1_ref.dtype), w1_ref[...],
                preferred_element_type=jnp.float32)
    y = y + b1_ref[...] + xp[1:hh + 1, :]                   # + residual (pre-ReLU x)
    o_ref[...] = y.astype(o_ref.dtype)


# ----------------------------------------------------------------------------
# Weight prep: fold the kx taps (and the zero padding along W) into banded
# (W*Cin, W*Cmid) slabs, one per ky.  Block (w_in, w_out) = W3[ky, kx] iff
# w_in == w_out + kx - 1 (out-of-range w_in simply has no entry == zero pad).
# ----------------------------------------------------------------------------
def _banded_conv3x3_weights(w3, ww, compute_dtype):
    _, _, cin, cmid = w3.shape
    w3f = w3.astype(jnp.float32)
    slabs = []
    for ky in range(3):
        band = jnp.zeros((ww, cin, ww, cmid), jnp.float32)
        for kx in range(3):
            shift = jnp.eye(ww, k=1 - kx, dtype=jnp.float32)   # [w_in, w_out]
            band = band + jnp.einsum('ab,io->aibo', shift, w3f[ky, kx])
        slabs.append(band.reshape(ww * cin, ww * cmid))
    return jnp.stack(slabs).astype(compute_dtype)              # (3, W*Cin, W*Cmid)


# ----------------------------------------------------------------------------
# ResBlock forward (matches the PyTorch module; public interface is NCHW)
# ----------------------------------------------------------------------------
def resblock_forward(params, x_nchw, *, compute_dtype=jnp.bfloat16):
    w3, b3, w1, b1 = params              # w3: (3,3,Cin,Cmid) HWIO;  w1: (1,1,Cmid,Cin)
    n, cin, hh, ww = x_nchw.shape
    cmid = w3.shape[-1]
    wc, wcm = ww * cin, ww * cmid

    # NCHW -> NHWC -> (N, H, W*Cin); zero-pad one row top/bottom (the H padding
    # of the 3x3 conv).  This is the only wrapper-side copy of x besides the
    # interface-imposed transposes.
    x = jnp.transpose(x_nchw, (0, 2, 3, 1)).reshape(n, hh, wc)
    xp = jnp.pad(x, ((0, 0), (1, 1), (0, 0)))                   # (N, H+2, W*Cin)

    # Tiny weight prep (fold into one-time param preprocessing in a real model).
    w3b = _banded_conv3x3_weights(w3, ww, compute_dtype)         # (3, W*Cin, W*Cmid)
    w1b = jnp.einsum('ab,io->aibo', jnp.eye(ww, dtype=jnp.float32),
                     w1.reshape(cmid, cin).astype(jnp.float32))
    w1b = w1b.reshape(wcm, wc).astype(compute_dtype)             # (W*Cmid, W*Cin)
    b3t = jnp.tile(b3.astype(jnp.float32), ww).reshape(1, wcm)
    b1t = jnp.tile(b1.astype(jnp.float32), ww).reshape(1, wc)

    xbytes = x_nchw.dtype.itemsize
    cost = pl.CostEstimate(
        flops=8 * n * hh * wc * wcm,          # 3 banded matmuls + 1 block-diag matmul
        transcendentals=0,
        bytes_accessed=(xp.size * xbytes + n * hh * wc * xbytes
                        + (w3b.size + w1b.size) * 2 + (b3t.size + b1t.size) * 4))

    out = pl.pallas_call(
        _resblock_kernel,
        out_shape=jax.ShapeDtypeStruct((n, hh, wc), x_nchw.dtype),
        grid=(n,),
        in_specs=[
            pl.BlockSpec((None, hh + 2, wc), lambda i: (i, 0, 0)),  # x (streamed, lane-dense)
            pl.BlockSpec((3, wc, wcm), lambda i: (0, 0, 0)),        # W3 bands (resident)
            pl.BlockSpec((1, wcm), lambda i: (0, 0)),               # b3 (tiled over W)
            pl.BlockSpec((wcm, wc), lambda i: (0, 0)),              # W1 block-diag (resident)
            pl.BlockSpec((1, wc), lambda i: (0, 0)),                # b1 (tiled over W)
        ],
        out_specs=pl.BlockSpec((None, hh, wc), lambda i: (i, 0, 0)),  # lane-dense store
        compiler_params=pltpu.CompilerParams(
            dimension_semantics=("parallel",),       # images are independent
            vmem_limit_bytes=32 * 1024 * 1024),      # safe on v5e/v6e/v7x; usage ~2 MiB
        cost_estimate=cost,
    )(xp, w3b, b3t, w1b, b1t)

    return jnp.transpose(out.reshape(n, hh, ww, cin), (0, 3, 1, 2))  # NHWC -> NCHW


# ----------------------------------------------------------------------------
# Parameter init (deterministic, matches nn.Conv2d default init; HWIO layout)
# ----------------------------------------------------------------------------
def _conv_params(key, kh, kw, cin, cout):
    kw_key, kb_key = jax.random.split(key)
    bound = 1.0 / jnp.sqrt(jnp.float32(kh * kw * cin))
    w = jax.random.uniform(kw_key, (kh, kw, cin, cout), jnp.float32, -bound, bound)
    b = jax.random.uniform(kb_key, (cout,), jnp.float32, -bound, bound)
    return w, b


def init_resblock_params(key, in_channel, channel):
    k0, k1 = jax.random.split(key)
    w3, b3 = _conv_params(k0, 3, 3, in_channel, channel)   # Conv2d(in_ch, ch, 3, pad=1)
    w1, b1 = _conv_params(k1, 1, 1, channel, in_channel)   # Conv2d(ch, in_ch, 1)
    return (w3, b3, w1, b1)


# ----------------------------------------------------------------------------
# Pure-JAX reference (f32) for a sanity check
# ----------------------------------------------------------------------------
def resblock_ref(params, x_nchw):
    w3, b3, w1, b1 = params
    dn = ("NCHW", "OIHW", "NCHW")
    h = jax.lax.conv_general_dilated(
        jnp.maximum(x_nchw, 0.0), jnp.transpose(w3, (3, 2, 0, 1)),
        window_strides=(1, 1), padding=((1, 1), (1, 1)), dimension_numbers=dn)
    h = jnp.maximum(h + b3.reshape(1, -1, 1, 1), 0.0)
    y = jax.lax.conv_general_dilated(
        h, jnp.transpose(w1, (3, 2, 0, 1)),
        window_strides=(1, 1), padding=((0, 0), (0, 0)), dimension_numbers=dn)
    return y + b1.reshape(1, -1, 1, 1) + x_nchw


if __name__ == "__main__":
    in_channel, channel = 32, 8          # ResBlock(in_channel=32, channel=8)
    N, H, W = 2, 16, 16

    root = jax.random.PRNGKey(0)
    k_params, k_x = jax.random.split(root)
    params = init_resblock_params(k_params, in_channel, channel)
    x = jax.random.normal(k_x, (N, in_channel, H, W), jnp.float32)   # NCHW

    fwd = jax.jit(resblock_forward)
    out = jax.block_until_ready(fwd(params, x))

    assert out.shape == (N, in_channel, H, W), out.shape
    ref = resblock_ref(params, x)
    # bf16 MXU operands vs f32 reference (residual kept exact in f32).
    assert jnp.allclose(out, ref, atol=5e-2, rtol=5e-2), float(
        jnp.max(jnp.abs(out - ref)))
    print("KERNEL_OK")
</pallas_src>

<mosaic_0001>
module attributes {stable_mosaic.version = 11 : i64} {
  func.func @_resblock_kernel(%arg0: i32, %arg1: memref<1x18x512xf32, #tpu.memory_space<vmem>>, %arg2: memref<3x512x128xbf16, #tpu.memory_space<vmem>>, %arg3: memref<1x128xf32, #tpu.memory_space<vmem>>, %arg4: memref<128x512xbf16, #tpu.memory_space<vmem>>, %arg5: memref<1x512xf32, #tpu.memory_space<vmem>>, %arg6: memref<1x16x512xf32, #tpu.memory_space<vmem>>) attributes {dimension_semantics = [#tpu.dimension_semantics<parallel>], iteration_bounds = array<i64: 2>, scalar_prefetch = 0 : i64, scratch_operands = 0 : i64, tpu.core_type = #tpu.core_type<tc>, window_params = [{transform_indices = @transform_0, window_bounds = array<i64: 1, 18, 512>}, {pipeline_mode = #tpu.pipeline_mode<synchronous>, transform_indices = @transform_1, window_bounds = array<i64: 3, 512, 128>}, {pipeline_mode = #tpu.pipeline_mode<synchronous>, transform_indices = @transform_2, window_bounds = array<i64: 1, 128>}, {pipeline_mode = #tpu.pipeline_mode<synchronous>, transform_indices = @transform_3, window_bounds = array<i64: 128, 512>}, {pipeline_mode = #tpu.pipeline_mode<synchronous>, transform_indices = @transform_4, window_bounds = array<i64: 1, 512>}, {transform_indices = @transform_5, window_bounds = array<i64: 1, 16, 512>}]} {
    %c0 = arith.constant 0 : index
    %c0_0 = arith.constant 0 : index
    %c0_1 = arith.constant 0 : index
    %0 = vector.load %arg1[%c0, %c0_0, %c0_1] : memref<1x18x512xf32, #tpu.memory_space<vmem>>, vector<1x18x512xf32>
    %1 = vector.shape_cast %0 : vector<1x18x512xf32> to vector<18x512xf32>
    %cst = arith.constant 0.000000e+00 : f32
    %2 = vector.broadcast %cst : f32 to vector<18x512xf32>
    %3 = arith.maximumf %1, %2 : vector<18x512xf32>
    %4 = arith.truncf %3 : vector<18x512xf32> to vector<18x512xbf16>
    %5 = vector.extract_strided_slice %4 {offsets = [0, 0], sizes = [16, 512], strides = [1, 1]} : vector<18x512xbf16> to vector<16x512xbf16>
    %c0_2 = arith.constant 0 : index
    %c0_3 = arith.constant 0 : index
    %c0_4 = arith.constant 0 : index
    %6 = vector.load %arg2[%c0_2, %c0_3, %c0_4] : memref<3x512x128xbf16, #tpu.memory_space<vmem>>, vector<1x512x128xbf16>
    %7 = vector.shape_cast %6 : vector<1x512x128xbf16> to vector<512x128xbf16>
    %cst_5 = arith.constant dense<0.000000e+00> : vector<16x128xf32>
    %8 = tpu.matmul %5, %7, %cst_5 {dimension_numbers = #tpu.dot_dimension_numbers<[1], [0], [0], [1], [0, 0, 1, 1], [], []>} : vector<16x512xbf16>, vector<512x128xbf16>, vector<16x128xf32> -> vector<16x128xf32>
    %9 = vector.extract_strided_slice %4 {offsets = [1, 0], sizes = [16, 512], strides = [1, 1]} : vector<18x512xbf16> to vector<16x512xbf16>
    %c1 = arith.constant 1 : index
    %c0_6 = arith.constant 0 : index
    %c0_7 = arith.constant 0 : index
    %10 = vector.load %arg2[%c1, %c0_6, %c0_7] : memref<3x512x128xbf16, #tpu.memory_space<vmem>>, vector<1x512x128xbf16>
    %11 = vector.shape_cast %10 : vector<1x512x128xbf16> to vector<512x128xbf16>
    %cst_8 = arith.constant dense<0.000000e+00> : vector<16x128xf32>
    %12 = tpu.matmul %9, %11, %cst_8 {dimension_numbers = #tpu.dot_dimension_numbers<[1], [0], [0], [1], [0, 0, 1, 1], [], []>} : vector<16x512xbf16>, vector<512x128xbf16>, vector<16x128xf32> -> vector<16x128xf32>
    %13 = arith.addf %8, %12 : vector<16x128xf32>
    %14 = vector.extract_strided_slice %4 {offsets = [2, 0], sizes = [16, 512], strides = [1, 1]} : vector<18x512xbf16> to vector<16x512xbf16>
    %c2 = arith.constant 2 : index
    %c0_9 = arith.constant 0 : index
    %c0_10 = arith.constant 0 : index
    %15 = vector.load %arg2[%c2, %c0_9, %c0_10] : memref<3x512x128xbf16, #tpu.memory_space<vmem>>, vector<1x512x128xbf16>
    %16 = vector.shape_cast %15 : vector<1x512x128xbf16> to vector<512x128xbf16>
    %cst_11 = arith.constant dense<0.000000e+00> : vector<16x128xf32>
    %17 = tpu.matmul %14, %16, %cst_11 {dimension_numbers = #tpu.dot_dimension_numbers<[1], [0], [0], [1], [0, 0, 1, 1], [], []>} : vector<16x512xbf16>, vector<512x128xbf16>, vector<16x128xf32> -> vector<16x128xf32>
    %18 = arith.addf %13, %17 : vector<16x128xf32>
    %c0_12 = arith.constant 0 : index
    %c0_13 = arith.constant 0 : index
    %19 = vector.load %arg3[%c0_12, %c0_13] : memref<1x128xf32, #tpu.memory_space<vmem>>, vector<1x128xf32>
    %20 = vector.broadcast %19 : vector<1x128xf32> to vector<16x128xf32>
    %21 = arith.addf %18, %20 : vector<16x128xf32>
    %cst_14 = arith.constant 0.000000e+00 : f32
    %22 = vector.broadcast %cst_14 : f32 to vector<16x128xf32>
    %23 = arith.maximumf %21, %22 : vector<16x128xf32>
    %24 = arith.truncf %23 : vector<16x128xf32> to vector<16x128xbf16>
    %c0_15 = arith.constant 0 : index
    %c0_16 = arith.constant 0 : index
    %25 = vector.load %arg4[%c0_15, %c0_16] : memref<128x512xbf16, #tpu.memory_space<vmem>>, vector<128x512xbf16>
    %cst_17 = arith.constant dense<0.000000e+00> : vector<16x512xf32>
    %26 = tpu.matmul %24, %25, %cst_17 {dimension_numbers = #tpu.dot_dimension_numbers<[1], [0], [0], [1], [0, 0, 1, 1], [], []>} : vector<16x128xbf16>, vector<128x512xbf16>, vector<16x512xf32> -> vector<16x512xf32>
    %c0_18 = arith.constant 0 : index
    %c0_19 = arith.constant 0 : index
    %27 = vector.load %arg5[%c0_18, %c0_19] : memref<1x512xf32, #tpu.memory_space<vmem>>, vector<1x512xf32>
    %28 = vector.broadcast %27 : vector<1x512xf32> to vector<16x512xf32>
    %29 = arith.addf %26, %28 : vector<16x512xf32>
    %30 = vector.extract_strided_slice %1 {offsets = [1, 0], sizes = [16, 512], strides = [1, 1]} : vector<18x512xf32> to vector<16x512xf32>
    %31 = arith.addf %29, %30 : vector<16x512xf32>
    %c0_20 = arith.constant 0 : index
    %c0_21 = arith.constant 0 : index
    %c0_22 = arith.constant 0 : index
    %32 = vector.load %arg6[%c0_20, %c0_21, %c0_22] : memref<1x16x512xf32, #tpu.memory_space<vmem>>, vector<1x16x512xf32>
    %33 = vector.shape_cast %32 : vector<1x16x512xf32> to vector<16x512xf32>
    %34 = vector.shape_cast %31 : vector<16x512xf32> to vector<1x16x512xf32>
    tpu.vector_store %arg6[%c0_20, %c0_21, %c0_22], %34 {strides = array<i32>} : memref<1x16x512xf32, #tpu.memory_space<vmem>>, vector<1x16x512xf32>,
    return
  }
  func.func @transform_0(%arg0: i32) -> (i32, i32, i32) {
    %c0_i32 = arith.constant 0 : i32
    %c0_i32_0 = arith.constant 0 : i32
    %c0_i32_1 = arith.constant 0 : i32
    return %arg0, %c0_i32, %c0_i32_0 : i32, i32, i32
  }
  func.func @transform_1(%arg0: i32) -> (i32, i32, i32) {
    %c0_i32 = arith.constant 0 : i32
    %c0_i32_0 = arith.constant 0 : i32
    %c0_i32_1 = arith.constant 0 : i32
    %c0_i32_2 = arith.constant 0 : i32
    return %c0_i32, %c0_i32_0, %c0_i32_1 : i32, i32, i32
  }
  func.func @transform_2(%arg0: i32) -> (i32, i32) {
    %c0_i32 = arith.constant 0 : i32
    %c0_i32_0 = arith.constant 0 : i32
    %c0_i32_1 = arith.constant 0 : i32
    return %c0_i32, %c0_i32_0 : i32, i32
  }
  func.func @transform_3(%arg0: i32) -> (i32, i32) {
    %c0_i32 = arith.constant 0 : i32
    %c0_i32_0 = arith.constant 0 : i32
    %c0_i32_1 = arith.constant 0 : i32
    return %c0_i32, %c0_i32_0 : i32, i32
  }
  func.func @transform_4(%arg0: i32) -> (i32, i32) {
    %c0_i32 = arith.constant 0 : i32
    %c0_i32_0 = arith.constant 0 : i32
    %c0_i32_1 = arith.constant 0 : i32
    return %c0_i32, %c0_i32_0 : i32, i32
  }
  func.func @transform_5(%arg0: i32) -> (i32, i32, i32) {
    %c0_i32 = arith.constant 0 : i32
    %c0_i32_0 = arith.constant 0 : i32
    %c0_i32_1 = arith.constant 0 : i32
    return %arg0, %c0_i32, %c0_i32_0 : i32, i32, i32
  }
}

</mosaic_0001>

<bundles_post_ra>
// kernel: tile.18
= control target key start
LH: loop header
LB: loop body
LE: loop exit
PB: predicated region body
PF: predicated region fallthrough
CT: control target
= control target key end

     0   :  { %s28_s0 = inlined_call_operand.vmem [shape: f32[32], index: 0, kind: input, shape index: {}]   ;;  %s29_s1 = inlined_call_operand.vmem [shape: f32[16,32], index: 1, kind: output, shape index: {}]  }
   0x1   :  { %v4_v0 = vld [vmem:[%s28_s0] ss:$0 sm:$0xff] }
   0x2   :  { %5 = vst [vmem:[%s29_s1] sm:$0xff] %v4_v0 }
   0x3   :  { %8 = vst [vmem:[%s29_s1 + $0x8] sm:$0xff] %v4_v0 }

// kernel: tile.19
= control target key start
LH: loop header
LB: loop body
LE: loop exit
PB: predicated region body
PF: predicated region fallthrough
CT: control target
= control target key end

     0   :  { %s56_s8 = smov 96   ;;  %s57_s11 = smov 32   ;;  %vm3_vm0 = vcmask 261120   ;;  %vm9_vm1 = vcmask 1048320   ;;  %vm15_vm2 = vcmask 785920   ;;  %vm21_vm3 = vcmask 523520   ;;  %s93_s0 = inlined_call_operand.vmem [shape: f32[16,32], index: 0, kind: input, shape index: {}]   ;;  %s94_s1 = inlined_call_operand.vmem [shape: f32[1,512], index: 1, kind: output, shape index: {}]  }
   0x1   :  { %v47_v0 = vld [vmem:[%s93_s0 + $0x3] ss:$4 sm:$0xf]   ;;  %v49_v1 = vld [vmem:[%s93_s0 + $0x1] ss:$4 sm:$0xf]  }
   0x2   :  { %7 = vrot.lane.b32.xlu0 %v47_v0, %s56_s8  ;;  %19 = vrot.lane.b32.xlu1 %v49_v1, %s57_s11  ;;  %v48_v2 = vld [vmem:[%s93_s0 + $0x2] ss:$4 sm:$0xf]   ;;  %s58_s14 = smov 64  }
   0x3   :  { %v2_v3 = vld [vmem:[%s93_s0] ss:$4 sm:$0xf]  }
   0x4   :  { %4 = vst.msk [vmem:[#allocation0] ss:$8 sm:$0xf] %vm3_vm0, %v2_v3  }
   0xa   :  { %13 = vrot.lane.b32.xlu0 %v48_v2, %s58_s14 }
  0x74   :  { %v8_v4 = vpop.permute.xlu0 %7   ;;  %v20_v5 = vpop.permute.xlu1 %19  }
  0x75   :  { %10 = vst.msk [vmem:[#allocation0] ss:$8 sm:$0xf] %vm9_vm1, %v8_v4  }
  0x7c   :  { %v14_v6 = vpop.permute.xlu0 %13  }
  0x7d   :  { %16 = vst.msk [vmem:[#allocation0] ss:$8 sm:$0xf] %vm15_vm2, %v14_v6  }
  0x7e   :  { %22 = vst.msk [vmem:[#allocation0] ss:$8 sm:$0xf] %vm21_vm3, %v20_v5  }
  0x85   :  { %v25_v7 = vld [vmem:[#allocation0] sm:$0x1]  ;;  %v30_v8 = vld [vmem:[#allocation0 + $0x8] sm:$0x1]  ;;  %v36_v9 = vld [vmem:[#allocation0 + $0x10] sm:$0x1] }
  0x86   :  { %28 = vst [vmem:[%s94_s1] sm:$0x1] %v25_v7  ;;  %v42_v10 = vld [vmem:[#allocation0 + $0x18] sm:$0x1] }
  0x87   :  { %50 = vst [vmem:[%s94_s1 + $0x1] sm:$0x1] %v30_v8 }
  0x88   :  { %51 = vst [vmem:[%s94_s1 + $0x2] sm:$0x1] %v36_v9 }
  0x89   :  { %52 = vst [vmem:[%s94_s1 + $0x3] sm:$0x1] %v42_v10 }

// kernel: tile.13
= control target key start
LH: loop header
LB: loop body
LE: loop exit
PB: predicated region body
PF: predicated region fallthrough
CT: control target
= control target key end

     0   :  { %s28_s0 = inlined_call_operand.vmem [shape: f32[8], index: 0, kind: input, shape index: {}]   ;;  %s29_s1 = inlined_call_operand.vmem [shape: f32[16,8], index: 1, kind: output, shape index: {}]  }
   0x1   :  { %v4_v0 = vld [vmem:[%s28_s0] ss:$0 sm:$0xff] }
   0x2   :  { %5 = vst [vmem:[%s29_s1] sm:$0xff] %v4_v0 }
   0x3   :  { %8 = vst [vmem:[%s29_s1 + $0x8] sm:$0xff] %v4_v0 }

// kernel: tile.14
= control target key start
LH: loop header
LB: loop body
LE: loop exit
PB: predicated region body
PF: predicated region fallthrough
CT: control target
= control target key end

     0   :  { %s131_s10 = smov 120   ;;  %s132_s11 = smov 104   ;;  %vm3_vm0 = vcmask 64512   ;;  %vm9_vm1 = vcmask 1048512   ;;  %vm15_vm2 = vcmask 982912   ;;  %vm21_vm3 = vcmask 917312   ;;  %s207_s0 = inlined_call_operand.vmem [shape: f32[16,8], index: 0, kind: input, shape index: {}]   ;;  %s208_s1 = inlined_call_operand.vmem [shape: f32[1,128], index: 1, kind: output, shape index: {}]  }
   0x1   :  { %v101_v0 = vld [vmem:[%s207_s0 + $0xf] sm:$0x1]   ;;  %v103_v1 = vld [vmem:[%s207_s0 + $0xd] sm:$0x1]   ;;  %v105_v2 = vld [vmem:[%s207_s0 + $0xb] sm:$0x1]  }
   0x2   :  { %7 = vrot.lane.b32.xlu0 %v101_v0, %s131_s10  ;;  %19 = vrot.lane.b32.xlu1 %v103_v1, %s132_s11  ;;  %s133_s14 = smov 88   ;;  %v102_v3 = vld [vmem:[%s207_s0 + $0xe] sm:$0x1]   ;;  %v104_v4 = vld [vmem:[%s207_s0 + $0xc] sm:$0x1]   ;;  %s134_s19 = smov 112  }
   0x3   :  { %31 = vrot.lane.b32.xlu2 %v105_v2, %s133_s14  ;;  %s135_s20 = smov 96   ;;  %v106_v5 = vld [vmem:[%s207_s0 + $0xa] sm:$0x1]   ;;  %s136_s23 = smov 80   ;;  %v107_v6 = vld [vmem:[%s207_s0 + $0x9] sm:$0x1]  }
   0x4   :  { %v108_v7 = vld [vmem:[%s207_s0 + $0x8] sm:$0x1]   ;;  %s137_s28 = smov 72   ;;  %s138_s29 = smov 64   ;;  %v109_v8 = vld [vmem:[%s207_s0 + $0x7] sm:$0x1]  }
   0x5   :  { %s139_s3 = smov 56   ;;  %v110_v9 = vld [vmem:[%s207_s0 + $0x6] sm:$0x1]   ;;  %v111_v10 = vld [vmem:[%s207_s0 + $0x5] sm:$0x1]   ;;  %s140_s8 = smov 48  }
   0x6   :  { %s141_s9 = smov 40   ;;  %v112_v11 = vld [vmem:[%s207_s0 + $0x4] sm:$0x1]   ;;  %s142_s12 = smov 32   ;;  %v113_v12 = vld [vmem:[%s207_s0 + $0x3] sm:$0x1]  }
   0x7   :  { %v114_v13 = vld [vmem:[%s207_s0 + $0x2] sm:$0x1]   ;;  %s143_s17 = smov 24   ;;  %s144_s18 = smov 16   ;;  %v115_v14 = vld [vmem:[%s207_s0 + $0x1] sm:$0x1]  }
   0x8   :  { %s145_s21 = smov 8   ;;  %v2_v15 = vld [vmem:[%s207_s0] sm:$0x1]   ;;  %vm27_vm4 = vcmask 851712   ;;  %vm33_vm5 = vcmask 786112   ;;  %vm39_vm6 = vcmask 720512  }
   0x9   :  { %4 = vst.msk [vmem:[#allocation0] sm:$0x1] %vm3_vm0, %v2_v15   ;;  %vm45_vm7 = vcmask 654912   ;;  %vm51_vm8 = vcmask 589312   ;;  %vm57_vm9 = vcmask 523712   ;;  %vm63_vm10 = vcmask 458112  }
   0xa   :  { %13 = vrot.lane.b32.xlu0 %v102_v3, %s134_s19  ;;  %25 = vrot.lane.b32.xlu1 %v104_v4, %s135_s20  ;;  %vm69_vm11 = vcmask 392512   ;;  %vm75_vm12 = vcmask 326912   ;;  %vm81_vm13 = vcmask 261312   ;;  %vm87_vm14 = vcmask 195712  }
   0xb   :  { %37 = vrot.lane.b32.xlu2 %v106_v5, %s136_s23  ;;  %vm93_vm15 = vcmask 130112  }
  0x12   :  { %43 = vrot.lane.b32.xlu0 %v107_v6, %s137_s28  ;;  %49 = vrot.lane.b32.xlu1 %v108_v7, %s138_s29 }
  0x13   :  { %55 = vrot.lane.b32.xlu2 %v109_v8, %s139_s3 }
  0x1a   :  { %61 = vrot.lane.b32.xlu0 %v110_v9, %s140_s8  ;;  %67 = vrot.lane.b32.xlu1 %v111_v10, %s141_s9 }
  0x1b   :  { %73 = vrot.lane.b32.xlu2 %v112_v11, %s142_s12 }
  0x22   :  { %79 = vrot.lane.b32.xlu0 %v113_v12, %s143_s17  ;;  %85 = vrot.lane.b32.xlu1 %v114_v13, %s144_s18 }
  0x23   :  { %91 = vrot.lane.b32.xlu2 %v115_v14, %s145_s21 }
  0x5d   :  { %v32_v16 = vpop.permute.xlu2 %31  }
  0x65   :  { %v38_v17 = vpop.permute.xlu2 %37  }
  0x6d   :  { %v56_v18 = vpop.permute.xlu2 %55  }
  0x74   :  { %v8_v19 = vpop.permute.xlu0 %7   ;;  %v20_v20 = vpop.permute.xlu1 %19  }
  0x75   :  { %10 = vst.msk [vmem:[#allocation0] sm:$0x1] %vm9_vm1, %v8_v19   ;;  %v74_v21 = vpop.permute.xlu2 %73  }
  0x7c   :  { %v14_v22 = vpop.permute.xlu0 %13   ;;  %v26_v23 = vpop.permute.xlu1 %25  }
  0x7d   :  { %16 = vst.msk [vmem:[#allocation0] sm:$0x1] %vm15_vm2, %v14_v22   ;;  %v92_v24 = vpop.permute.xlu2 %91  }
  0x7e   :  { %22 = vst.msk [vmem:[#allocation0] sm:$0x1] %vm21_vm3, %v20_v20  }
  0x7f   :  { %28 = vst.msk [vmem:[#allocation0] sm:$0x1] %vm27_vm4, %v26_v23  }
  0x80   :  { %34 = vst.msk [vmem:[#allocation0] sm:$0x1] %vm33_vm5, %v32_v16  }
  0x81   :  { %40 = vst.msk [vmem:[#allocation0] sm:$0x1] %vm39_vm6, %v38_v17  }
  0x84   :  { %v44_v25 = vpop.permute.xlu0 %43   ;;  %v50_v26 = vpop.permute.xlu1 %49  }
  0x85   :  { %46 = vst.msk [vmem:[#allocation0] sm:$0x1] %vm45_vm7, %v44_v25  }
  0x86   :  { %52 = vst.msk [vmem:[#allocation0] sm:$0x1] %vm51_vm8, %v50_v26  }
  0x87   :  { %58 = vst.msk [vmem:[#allocation0] sm:$0x1] %vm57_vm9, %v56_v18  }
  0x8c   :  { %v62_v27 = vpop.permute.xlu0 %61   ;;  %v68_v28 = vpop.permute.xlu1 %67  }
  0x8d   :  { %64 = vst.msk [vmem:[#allocation0] sm:$0x1] %vm63_vm10, %v62_v27  }
  0x8e   :  { %70 = vst.msk [vmem:[#allocation0] sm:$0x1] %vm69_vm11, %v68_v28  }
  0x8f   :  { %76 = vst.msk [vmem:[#allocation0] sm:$0x1] %vm75_vm12, %v74_v21  }
  0x94   :  { %v80_v29 = vpop.permute.xlu0 %79   ;;  %v86_v30 = vpop.permute.xlu1 %85  }
  0x95   :  { %82 = vst.msk [vmem:[#allocation0] sm:$0x1] %vm81_vm13, %v80_v29  }
  0x96   :  { %88 = vst.msk [vmem:[#allocation0] sm:$0x1] %vm87_vm14, %v86_v30  }
  0x97   :  { %94 = vst.msk [vmem:[#allocation0] sm:$0x1] %vm93_vm15, %v92_v24  }
  0x9e   :  { %v97_v31 = vld [vmem:[#allocation0] sm:$0x1] }
  0x9f   :  { %100 = vst [vmem:[%s208_s1] sm:$0x1] %v97_v31 }

// kernel: resblock_forward.1
= control target key start
LH: loop header
LB: loop body
LE: loop exit
PB: predicated region body
PF: predicated region fallthrough
CT: control target
= control target key end

     0   :  { %s2501_s18 = smov 0   ;;  %s3163_s0 = inlined_call_operand.vmem [shape: f32[2,18,512], index: 0, kind: input, shape index: {}]   ;;  %s3164_s1 = inlined_call_operand.vmem [shape: bf16[3,512,128], index: 1, kind: input, shape index: {}]   ;;  %s3165_s2 = inlined_call_operand.vmem [shape: f32[1,128], index: 2, kind: input, shape index: {}]   ;;  %s3166_s3 = inlined_call_operand.vmem [shape: bf16[128,512], index: 3, kind: input, shape index: {}]   ;;  %s3167_s4 = inlined_call_operand.vmem [shape: f32[1,512], index: 4, kind: input, shape index: {}]   ;;  %s3168_s5 = inlined_call_operand.vmem [shape: f32[2,16,512], index: 5, kind: output, shape index: {}]  }
   0x1 LB: > { %s1674_s19 = sadd.s32 4294967295, %s2469_s18   ;;  %p1678_p0 = scmp.ge.s32.totalorder %s2469_s18, 1  ;;  %s2469_s18 = sphi %s2501_s18, %s15_s18  }
   0x2   : > { %p187_p1 = scmp.lt.s32.totalorder %s2469_s18, 3 }
   0x4   : > { %p188_p2 = pnand %p1678_p0, %p187_p1 }
   0x5   : > { %p215_p3 = scmp.lt.s32.totalorder (!%p188_p2), %s1674_s19, 1 }
   0x6   : > { %191 = sbr.rel (%p188_p2) target bundleno = 408 (0x198), region = 40 }
   0xb   : > { %v2364_v0 = vld [vmem:[%s3164_s1 + $0x138] sm:$0xff]  ;;  %v2363_v4 = vld [vmem:[%s3164_s1 + $0x130] sm:$0xff]  ;;  %s3170_s19 = smov (!%p215_p3, %s1674_s19), 1  ;;  %v2362_v8 = vld [vmem:[%s3164_s1 + $0x128] sm:$0xff]  ;;  %vm410_vm0 = vsmask.f32 7424 }
   0xc   : > { %v2372_v1 = vld [vmem:[%s3164_s1 + $0x178] sm:$0xff]  ;;  %655 = vmatpush.bf16.msra.mxu0 %v2364_v0  ;;  %v2371_v5 = vld [vmem:[%s3164_s1 + $0x170] sm:$0xff]  ;;  %v2370_v9 = vld [vmem:[%s3164_s1 + $0x168] sm:$0xff]  ;;  %s2453_s21 = smul.u32 96, %s3170_s19  ;;  %vm1028_vm1 = vcmask 1046528   ;;  %s2324_s26 = sshll.u32 %s3170_s19, 6 }
   0xd   : > { %v2380_v2 = vld [vmem:[%s3164_s1 + $0x1b8] sm:$0xff]  ;;  %669 = vmatpush.bf16.msra.mxu1 %v2372_v1  ;;  %v2379_v6 = vld [vmem:[%s3164_s1 + $0x1b0] sm:$0xff]  ;;  %v2378_v10 = vld [vmem:[%s3164_s1 + $0x1a8] sm:$0xff]  ;;  %s3136_s29 = scalar_lea.vmem %s3168_s5, %s2324_s26 }
   0xe   : > { %v2388_v3 = vld [vmem:[%s3164_s1 + $0x1f8] sm:$0xff]  ;;  %683 = vmatpush.bf16.msra.mxu2 %v2380_v2  ;;  %v2387_v7 = vld [vmem:[%s3164_s1 + $0x1f0] sm:$0xff]  ;;  %v2386_v11 = vld [vmem:[%s3164_s1 + $0x1e8] sm:$0xff]  ;;  %s2563_s7 = scalar_lea.vmem %s3163_s0, %s2453_s21 }
   0xf   : > { %697 = vmatpush.bf16.msra.mxu3 %v2388_v3  ;;  %v2361_v12 = vld [vmem:[%s3164_s1 + $0x120] sm:$0xff]  ;;  %v2360_v16 = vld [vmem:[%s3164_s1 + $0x118] sm:$0xff]  ;;  %v2359_v20 = vld [vmem:[%s3164_s1 + $0x110] sm:$0xff] }
  0x10   : > { %656 = vmatpush.bf16.msra.mxu0 %v2363_v4  ;;  %v2369_v13 = vld [vmem:[%s3164_s1 + $0x160] sm:$0xff]  ;;  %v2368_v17 = vld [vmem:[%s3164_s1 + $0x158] sm:$0xff]  ;;  %v2367_v21 = vld [vmem:[%s3164_s1 + $0x150] sm:$0xff] }
  0x11   : > { %670 = vmatpush.bf16.msra.mxu1 %v2371_v5  ;;  %v2377_v14 = vld [vmem:[%s3164_s1 + $0x1a0] sm:$0xff]  ;;  %v2376_v18 = vld [vmem:[%s3164_s1 + $0x198] sm:$0xff]  ;;  %v2587_v23 = vld [vmem:[%s2563_s7 + $0x8] sm:$0xff] }
  0x12   : > { %684 = vmatpush.bf16.msra.mxu2 %v2379_v6  ;;  %v2385_v15 = vld [vmem:[%s3164_s1 + $0x1e0] sm:$0xff]  ;;  %v2384_v19 = vld [vmem:[%s3164_s1 + $0x1d8] sm:$0xff]  ;;  %v2375_v25 = vld [vmem:[%s3164_s1 + $0x190] sm:$0xff]  ;;  %v238_v31 = vmax.f32 %v2587_v23, 0.0 }
  0x13   : > { %698 = vmatpush.bf16.msra.mxu3 %v2387_v7  ;;  %v2584_v22 = vld [vmem:[%s2563_s7] sm:$0xff]  ;;  %v2383_v26 = vld [vmem:[%s3164_s1 + $0x1d0] sm:$0xff]  ;;  %v2599_v27 = vld [vmem:[%s2563_s7 + $0x28] sm:$0xff] }
  0x14   : > { %657 = vmatpush.bf16.msra.mxu0 %v2362_v8  ;;  %v2590_v24 = vld [vmem:[%s2563_s7 + $0x20] sm:$0xff]  ;;  %v2605_v29 = vld [vmem:[%s2563_s7 + $0x48] sm:$0x3]  ;;  %v237_v30 = vmax.f32 %v2584_v22, 0.0  ;;  %v242_v33 = vmax.f32 %v2599_v27, 0.0  ;;  %v2613_v35 = vld [vmem:[%s2563_s7 + $0x10] sm:$0xff] }
  0x15   : > { %671 = vmatpush.bf16.msra.mxu1 %v2370_v9  ;;  %v2602_v28 = vld [vmem:[%s2563_s7 + $0x40] sm:$0x3]  ;;  %v241_v32 = vmax.f32 %v2590_v24, 0.0  ;;  %v2616_v36 = vld [vmem:[%s2563_s7 + $0x18] sm:$0xff]  ;;  %v246_v37 = vmax.f32 %v2605_v29, 0.0  ;;  %v2620_v38 = vld [vmem:[%s2563_s7 + $0x30] sm:$0xff] }
  0x16   : > { %685 = vmatpush.bf16.msra.mxu2 %v2378_v10  ;;  %v245_v34 = vmax.f32 %v2602_v28, 0.0  ;;  %v2623_v39 = vld [vmem:[%s2563_s7 + $0x38] sm:$0xff]  ;;  %v2626_v40 = vld [vmem:[%s2563_s7 + $0x50] sm:$0x3]  ;;  %v239_v41 = vmax.f32 %v2613_v35, 0.0  ;;  %v249_v42 = vpack.c.bf16 %v238_v31, %v237_v30  ;;  %v240_v45 = vmax.f32 %v2616_v36, 0.0 }
  0x17   : > { %699 = vmatpush.bf16.msra.mxu3 %v2386_v11  ;;  %v251_v43 = vpack.c.bf16 %v242_v33, %v241_v32  ;;  %v2630_v44 = vld [vmem:[%s2563_s7 + $0x58] sm:$0x3]  ;;  %v243_v46 = vmax.f32 %v2620_v38, 0.0  ;;  %v244_v48 = vmax.f32 %v2623_v39, 0.0  ;;  %v247_v49 = vmax.f32 %v2626_v40, 0.0  ;;  %v2358_v51 = vld [vmem:[%s3164_s1 + $0x108] sm:$0xff] }
  0x18   : > { %658 = vmatpush.bf16.msra.mxu0 %v2361_v12  ;;  %v253_v47 = vpack.c.bf16 %v246_v37, %v245_v34  ;;  %v248_v50 = vmax.f32 %v2630_v44, 0.0  ;;  %v2366_v52 = vld [vmem:[%s3164_s1 + $0x148] sm:$0xff]  ;;  %v390_v53 = vunpack.c.l.b16 %v249_v42  ;;  %v250_v55 = vpack.c.bf16 %v240_v45, %v239_v41  ;;  %v2357_v7 = vld [vmem:[%s3164_s1 + $0x100] sm:$0xff]  ;;  %v2348_v31 = vld [vmem:[%s3164_s1 + $0xb8] sm:$0xff] }
  0x19   : > { %672 = vmatpush.bf16.msra.mxu1 %v2369_v13  ;;  %v394_v54 = vunpack.c.l.b16 %v251_v43  ;;  %v391_v56 = vunpack.c.h.b16 %v249_v42  ;;  %v2374_v57 = vld [vmem:[%s3164_s1 + $0x188] sm:$0xff]  ;;  %v252_v60 = vpack.c.bf16 %v244_v48, %v243_v46  ;;  %v395_v62 = vunpack.c.h.b16 %v251_v43  ;;  %v2365_v8 = vld [vmem:[%s3164_s1 + $0x140] sm:$0xff]  ;;  %v2356_v32 = vld [vmem:[%s3164_s1 + $0xf8] sm:$0xff] }
  0x1a   : > { %686 = vmatpush.bf16.msra.mxu2 %v2377_v14  ;;  %v2382_v58 = vld [vmem:[%s3164_s1 + $0x1c8] sm:$0xff]  ;;  %v398_v59 = vunpack.c.l.b16 %v253_v47  ;;  %v254_v61 = vpack.c.bf16 %v248_v50, %v247_v49  ;;  %v392_v0 = vunpack.c.l.b16 %v250_v55  ;;  %v399_v1 = vunpack.c.h.b16 %v253_v47  ;;  %v2373_v13 = vld [vmem:[%s3164_s1 + $0x180] sm:$0xff]  ;;  %v2331_v50 = vld [vmem:[%s3164_s1 + $0x30] sm:$0xff] }
  0x1b   : > { %700 = vmatpush.bf16.msra.mxu3 %v2385_v15  ;;  %v2649_v63 = vpack.c.b16 %v394_v54, %v390_v53  ;;  %v393_v2 = vunpack.c.h.b16 %v250_v55  ;;  %v396_v4 = vunpack.c.l.b16 %v252_v60  ;;  %v2653_v6 = vpack.c.b16 %v395_v62, %v391_v56  ;;  %v2381_v14 = vld [vmem:[%s3164_s1 + $0x1c0] sm:$0xff]  ;;  %v2347_v56 = vld [vmem:[%s3164_s1 + $0xb0] sm:$0xff] }
  0x1c   : > { %659 = vmatpush.bf16.msra.mxu0 %v2360_v16  ;;  %v2651_v3 = vpack.c.b16 %v398_v59, %v398_v59  ;;  %v400_v5 = vunpack.c.l.b16 %v254_v61  ;;  %v2663_v11 = vpack.c.b16 %v399_v1, %v399_v1  ;;  %v397_v12 = vunpack.c.h.b16 %v252_v60  ;;  %v2330_v1 = vld [vmem:[%s3164_s1 + $0x28] sm:$0xff] }
  0x1d   : > { %673 = vmatpush.bf16.msra.mxu1 %v2368_v17  ;;  %v412_v9 = vshrl.u32 %v2649_v63, 16  ;;  %v414_v10 = vshll.u32 %v2649_v63, 16  ;;  %v2672_v16 = vpack.c.b16 %v396_v4, %v392_v0  ;;  %v401_v30 = vunpack.c.h.b16 %v254_v61 }
  0x1e   : > { %687 = vmatpush.bf16.msra.mxu2 %v2376_v18  ;;  %v419_v15 = vshll.u32 %v2651_v3, 16  ;;  %v2674_v17 = vpack.c.b16 %v400_v5, %v400_v5  ;;  %v424_v18 = vshrl.u32 %v2653_v6, 16  ;;  %v2694_v46 = vpack.c.b16 %v397_v12, %v393_v2  ;;  %v2338_v2 = vld [vmem:[%s3164_s1 + $0x68] sm:$0xff]  ;;  %v2345_v12 = vld [vmem:[%s3164_s1 + $0xa0] sm:$0xff] }
  0x1f   : > { %701 = vmatpush.bf16.msra.mxu3 %v2384_v19  ;;  %v2332_v19 = vld [vmem:[%s3164_s1 + $0x38] sm:$0xff]  ;;  %v436_v34 = vshrl.u32 %v2672_v16, 16  ;;  %v438_v37 = vshll.u32 %v2672_v16, 16  ;;  %v2696_v49 = vpack.c.b16 %v401_v30, %v401_v30  ;;  %v2346_v5 = vld [vmem:[%s3164_s1 + $0xa8] sm:$0xff] }
  0x20   : > { %660 = vmatpush.bf16.msra.mxu0 %v2359_v20  ;;  %v2340_v20 = vld [vmem:[%s3164_s1 + $0x78] sm:$0xff]  ;;  %v421_v33 = vrot.slane %v419_v15, 1  ;;  %v443_v41 = vshll.u32 %v2674_v17, 16  ;;  %v448_v54 = vshrl.u32 %v2694_v46, 16  ;;  %v450_v55 = vshll.u32 %v2694_v46, 16  ;;  %v2326_v30 = vld [vmem:[%s3164_s1 + $0x8] sm:$0xff] }
  0x21   : > { %674 = vmatpush.bf16.msra.mxu1 %v2367_v21  ;;  %v416_v21 = vrot.slane %v414_v10, 1  ;;  %v440_v47 = vrot.slane %v438_v37, 1  ;;  %v455_v59 = vshll.u32 %v2696_v49, 16  ;;  %v2337_v10 = vld [vmem:[%s3164_s1 + $0x60] sm:$0xff]  ;;  %v2336_v15 = vld [vmem:[%s3164_s1 + $0x58] sm:$0xff] }
  0x22   : > { %688 = vmatpush.bf16.msra.mxu2 %v2375_v25  ;;  %v426_v25 = vshll.u32 %v2653_v6, 16  ;;  %v445_v48 = vrot.slane %v443_v41, 1  ;;  %v452_v61 = vrot.slane %v450_v55, 1  ;;  %v2333_v37 = vld [vmem:[%s3164_s1 + $0x40] sm:$0xff]  ;;  %v2402_v55 = vld [vmem:[%s3164_s1 + $0x268] sm:$0xff] }
  0x23   : > { %702 = vmatpush.bf16.msra.mxu3 %v2383_v26  ;;  %v431_v26 = vshll.u32 %v2663_v11, 16  ;;  %v417_v42 = vor.u32 %v416_v21, %v412_v9  ;;  %v457_v0 = vrot.slane %v455_v59, 1  ;;  %v2329_v9 = vld [vmem:[%s3164_s1 + $0x20] sm:$0xff]  ;;  %v2335_v21 = vld [vmem:[%s3164_s1 + $0x50] sm:$0xff] }
  0x24   : > { %661 = vmatpush.bf16.msra.mxu0 %v2358_v51  ;;  %v428_v43 = vrot.slane %v426_v25, 1  ;;  %v2339_v51 = vld [vmem:[%s3164_s1 + $0x70] sm:$0xff]  ;;  %v453_v4 = vor.u32 %v452_v61, %v448_v54  ;;  %v2341_v41 = vld [vmem:[%s3164_s1 + $0x80] sm:$0xff]  ;;  %v2394_v54 = vld [vmem:[%s3164_s1 + $0x228] sm:$0xff] }
  0x25   : > { %675 = vmatpush.bf16.msra.mxu1 %v2366_v52  ;;  %v433_v45 = vrot.slane %v431_v26, 1  ;;  %v422_v52 = vsel %vm410_vm0, %v417_v42, %v421_v33  ;;  %v2343_v25 = vld [vmem:[%s3164_s1 + $0x90] sm:$0xff]  ;;  %v2350_v33 = vld [vmem:[%s3164_s1 + $0xc8] sm:$0xff]  ;;  %v2349_v42 = vld [vmem:[%s3164_s1 + $0xc0] sm:$0xff] }
  0x26   : > { %689 = vmatpush.bf16.msra.mxu2 %v2374_v57  ;;  %v429_v53 = vor.u32 %v428_v43, %v424_v18  ;;  %v2355_v57 = vld [vmem:[%s3164_s1 + $0xf0] sm:$0xff]  ;;  %v2344_v18 = vld [vmem:[%s3164_s1 + $0x98] sm:$0xff]  ;;  %v2401_v59 = vld [vmem:[%s3164_s1 + $0x260] sm:$0xff] }
  0x27   : > { %703 = vmatpush.bf16.msra.mxu3 %v2382_v58  ;;  %v441_v58 = vor.u32 %v440_v47, %v436_v34  ;;  %v2351_v26 = vld [vmem:[%s3164_s1 + $0xd0] sm:$0xff]  ;;  %v2325_v34 = vld [vmem:[%s3164_s1] sm:$0xff]  ;;  %v2396_v43 = vld [vmem:[%s3164_s1 + $0x238] sm:$0xff] }
  0x28   : > { %662 = vmatpush.bf16.msra.mxu0 %v2357_v7  ;;  %v434_v60 = vsel %vm410_vm0, %v429_v53, %v433_v45  ;;  %v2354_v7 = vld [vmem:[%s3164_s1 + $0xe8] sm:$0xff]  ;;  %v2404_v45 = vld [vmem:[%s3164_s1 + $0x278] sm:$0xff]  ;;  %v2419_v53 = vld [vmem:[%s3164_s1 + $0x2f0] sm:$0xff] }
  0x29   : > { %676 = vmatpush.bf16.msra.mxu1 %v2365_v8  ;;  %v446_v62 = vsel %vm410_vm0, %v441_v58, %v445_v48  ;;  %v458_v8 = vsel %vm410_vm0, %v453_v4, %v457_v0  ;;  %v2412_v47 = vld [vmem:[%s3164_s1 + $0x2b8] sm:$0xff]  ;;  %v2393_v58 = vld [vmem:[%s3164_s1 + $0x220] sm:$0xff]  ;;  %v2391_v4 = vld [vmem:[%s3164_s1 + $0x210] sm:$0xff] }
  0x2a   : > { %690 = vmatpush.bf16.msra.mxu2 %v2373_v13  ;;  %v2353_v13 = vld [vmem:[%s3164_s1 + $0xe0] sm:$0xff]  ;;  %v2420_v48 = vld [vmem:[%s3164_s1 + $0x2f8] sm:$0xff] }
  0x2b   : > { %704 = vmatpush.bf16.msra.mxu3 %v2381_v14  ;;  %663 = vmatmul.bf16.vlgmr.msra.gmra.mxu0 %v422_v52  ;;  %v2328_v14 = vld [vmem:[%s3164_s1 + $0x18] sm:$0xff]  ;;  %v2411_v52 = vld [vmem:[%s3164_s1 + $0x2b0] sm:$0xff]  ;;  %v2417_v61 = vld [vmem:[%s3164_s1 + $0x2e0] sm:$0xff] }
  0x2c   : > { %907 = vmatpush.bf16.msrb.mxu0 %v2332_v19  ;;  %677 = vmatmul.bf16.vlgmr.msra.gmra.mxu1 %v434_v60  ;;  %v2352_v19 = vld [vmem:[%s3164_s1 + $0xd8] sm:$0xff]  ;;  %v2409_v60 = vld [vmem:[%s3164_s1 + $0x2a0] sm:$0xff] }
  0x2d   : > { %921 = vmatpush.bf16.msrb.mxu1 %v2340_v20  ;;  %691 = vmatmul.bf16.vlgmr.msra.gmra.mxu2 %v446_v62  ;;  %v2327_v20 = vld [vmem:[%s3164_s1 + $0x10] sm:$0xff]  ;;  %v2392_v62 = vld [vmem:[%s3164_s1 + $0x218] sm:$0xff] }
  0x2e   : > { %935 = vmatpush.bf16.msrb.mxu2 %v2348_v31  ;;  %705 = vmatmul.bf16.vlgmr.msra.gmra.mxu3 %v458_v8  ;;  %v2334_v31 = vld [vmem:[%s3164_s1 + $0x48] sm:$0xff]  ;;  %v2400_v0 = vld [vmem:[%s3164_s1 + $0x258] sm:$0xff]  ;;  %v2415_v8 = vld [vmem:[%s3164_s1 + $0x2d0] sm:$0xff] }
  0x2f   : > { %949 = vmatpush.bf16.msrb.mxu3 %v2356_v32  ;;  %v2342_v32 = vld [vmem:[%s3164_s1 + $0x88] sm:$0xff] }
  0x30   : > { %908 = vmatpush.bf16.msrb.mxu0 %v2331_v50  ;;  %v2395_v50 = vld [vmem:[%s3164_s1 + $0x230] sm:$0xff] }
  0x31   : > { %922 = vmatpush.bf16.msrb.mxu1 %v2339_v51  ;;  %v2403_v51 = vld [vmem:[%s3164_s1 + $0x270] sm:$0xff] }
  0x32   : > { %936 = vmatpush.bf16.msrb.mxu2 %v2347_v56  ;;  %v2410_v56 = vld [vmem:[%s3164_s1 + $0x2a8] sm:$0xff] }
  0x33   : > { %950 = vmatpush.bf16.msrb.mxu3 %v2355_v57  ;;  %v2418_v57 = vld [vmem:[%s3164_s1 + $0x2e8] sm:$0xff] }
  0x34   : > { %909 = vmatpush.bf16.msrb.mxu0 %v2330_v1  ;;  %v2408_v1 = vld [vmem:[%s3164_s1 + $0x298] sm:$0xff] }
  0x35   : > { %923 = vmatpush.bf16.msrb.mxu1 %v2338_v2  ;;  %v2416_v2 = vld [vmem:[%s3164_s1 + $0x2d8] sm:$0xff] }
  0x36   : > { %937 = vmatpush.bf16.msrb.mxu2 %v2346_v5  ;;  %v2399_v5 = vld [vmem:[%s3164_s1 + $0x250] sm:$0xff] }
  0x37   : > { %951 = vmatpush.bf16.msrb.mxu3 %v2354_v7  ;;  %v2407_v7 = vld [vmem:[%s3164_s1 + $0x290] sm:$0xff] }
  0x38   : > { %910 = vmatpush.bf16.msrb.mxu0 %v2329_v9  ;;  %v2390_v9 = vld [vmem:[%s3164_s1 + $0x208] sm:$0xff] }
  0x39   : > { %924 = vmatpush.bf16.msrb.mxu1 %v2337_v10  ;;  %v2398_v10 = vld [vmem:[%s3164_s1 + $0x248] sm:$0xff] }
  0x3a   : > { %938 = vmatpush.bf16.msrb.mxu2 %v2345_v12  ;;  %v2406_v12 = vld [vmem:[%s3164_s1 + $0x288] sm:$0xff] }
  0x3b   : > { %952 = vmatpush.bf16.msrb.mxu3 %v2353_v13  ;;  %v2414_v13 = vld [vmem:[%s3164_s1 + $0x2c8] sm:$0xff] }
  0x3c   : > { %911 = vmatpush.bf16.msrb.mxu0 %v2328_v14  ;;  %v2389_v14 = vld [vmem:[%s3164_s1 + $0x200] sm:$0xff] }
  0x3d   : > { %925 = vmatpush.bf16.msrb.mxu1 %v2336_v15  ;;  %v2397_v15 = vld [vmem:[%s3164_s1 + $0x240] sm:$0xff] }
  0x3e   : > { %939 = vmatpush.bf16.msrb.mxu2 %v2344_v18  ;;  %v1029_v18 = vrot.slane %v2649_v63, 1 }
  0x3f   : > { %953 = vmatpush.bf16.msrb.mxu3 %v2352_v19  ;;  %v1030_v19 = vrot.slane %v2651_v3, 1  ;;  %v1038_v3 = vrot.slane %v2694_v46, 1 }
  0x40   : > { %912 = vmatpush.bf16.msrb.mxu0 %v2327_v20  ;;  %v1032_v20 = vrot.slane %v2653_v6, 1 }
  0x41   : > { %926 = vmatpush.bf16.msrb.mxu1 %v2335_v21  ;;  %v1033_v21 = vrot.slane %v2663_v11, 1  ;;  %v1031_v11 = vsel %vm1028_vm1, %v1029_v18, %v1030_v19  ;;  %v2286_v18 = vld [vmem:[%s3166_s3 + $0xb8] sm:$0xf0] }
  0x42   : > { %940 = vmatpush.bf16.msrb.mxu2 %v2343_v25  ;;  %v2405_v25 = vld [vmem:[%s3164_s1 + $0x280] sm:$0xff] }
  0x43   : > { %954 = vmatpush.bf16.msrb.mxu3 %v2351_v26  ;;  %v2413_v26 = vld [vmem:[%s3164_s1 + $0x2c0] sm:$0xff] }
  0x44   : > { %913 = vmatpush.bf16.msrb.mxu0 %v2326_v30  ;;  %v1035_v30 = vrot.slane %v2672_v16, 1 }
  0x45   : > { %927 = vmatpush.bf16.msrb.mxu1 %v2334_v31  ;;  %v1034_v31 = vsel %vm1028_vm1, %v1032_v20, %v1033_v21 }
  0x46   : > { %941 = vmatpush.bf16.msrb.mxu2 %v2342_v32 }
  0x47   : > { %955 = vmatpush.bf16.msrb.mxu3 %v2350_v33 }
  0x48   : > { %914 = vmatpush.bf16.msrb.mxu0 %v2325_v34  ;;  %v2310_v34 = vld [vmem:[%s3166_s3 + $0xf0] sm:$0xf0] }
  0x49   : > { %928 = vmatpush.bf16.msrb.mxu1 %v2333_v37  ;;  %v2316_v37 = vld [vmem:[%s3166_s3 + $0xe8] sm:$0xf] }
  0x4a   : > { %942 = vmatpush.bf16.msrb.mxu2 %v2341_v41  ;;  %v2452_v41 = vld [vmem:[%s3166_s3 + $0xf4] sm:$0xf0] }
  0x4b   : > { %956 = vmatpush.bf16.msrb.mxu3 %v2349_v42  ;;  %915 = vmatmul.bf16.vlgmr.msrb.gmra.mxu0 %v2649_v63  ;;  %v1036_v63 = vrot.slane %v2674_v17, 1  ;;  %v2451_v17 = vld [vmem:[%s3166_s3 + $0xec] sm:$0xf0] }
  0x4c   : > { %1237 = vmatpush.bf16.msra.mxu0 %v2396_v43  ;;  %929 = vmatmul.bf16.vlgmr.msrb.gmra.mxu1 %v2653_v6  ;;  %v1039_v6 = vrot.slane %v2696_v49, 1  ;;  %v2317_v43 = vor.u32 %v2452_v41, %v2316_v37 }
  0x4d   : > { %1251 = vmatpush.bf16.msra.mxu1 %v2404_v45  ;;  %943 = vmatmul.bf16.vlgmr.msrb.gmra.mxu2 %v2672_v16  ;;  %v1037_v32 = vsel %vm1028_vm1, %v1035_v30, %v1036_v63  ;;  %v2308_v16 = vld [vmem:[%s3166_s3 + $0xe0] sm:$0xf]  ;;  %v2450_v45 = vld [vmem:[%s3166_s3 + $0xec] sm:$0xf]  ;;  %v2437_v30 = vld [vmem:[%s3166_s3 + $0x84] sm:$0xf] }
  0x4e   : > { %1265 = vmatpush.bf16.msra.mxu2 %v2412_v47  ;;  %957 = vmatmul.bf16.vlgmr.msrb.gmra.mxu3 %v2694_v46  ;;  %v1040_v33 = vsel %vm1028_vm1, %v1038_v3, %v1039_v6  ;;  %v2449_v46 = vld [vmem:[%s3166_s3 + $0xe4] sm:$0xf]  ;;  %v2309_v49 = vor.u32 %v2451_v17, %v2308_v16  ;;  %v2318_v47 = vld [vmem:[%s3166_s3 + $0xf8] sm:$0xf0]  ;;  %v2262_v3 = vld [vmem:[%s3166_s3 + $0x90] sm:$0xf0] }
  0x4f   : > { %1279 = vmatpush.bf16.msra.mxu3 %v2420_v48  ;;  %v2313_v42 = vor.u32 %v2449_v46, %v2310_v34  ;;  %v2321_v48 = vor.u32 %v2450_v45, %v2318_v47  ;;  %v2268_v6 = vld [vmem:[%s3166_s3 + $0x88] sm:$0xf]  ;;  %v2270_v16 = vld [vmem:[%s3166_s3 + $0x98] sm:$0xf0]  ;;  %v2244_v46 = vld [vmem:[%s3166_s3 + $0x60] sm:$0xf] }
  0x50   : > { %1238 = vmatpush.bf16.msra.mxu0 %v2395_v50  ;;  %v2433_v34 = vld [vmem:[%s3166_s3 + $0x64] sm:$0xf]  ;;  %v2252_v45 = vld [vmem:[%s3166_s3 + $0x68] sm:$0xf]  ;;  %v2436_v47 = vld [vmem:[%s3166_s3 + $0x74] sm:$0xf0] }
  0x51   : > { %1252 = vmatpush.bf16.msra.mxu1 %v2403_v51 }
  0x52   : > { %1266 = vmatpush.bf16.msra.mxu2 %v2411_v52  ;;  %v2292_v52 = vld [vmem:[%s3166_s3 + $0xc0] sm:$0xf] }
  0x53   : > { %1280 = vmatpush.bf16.msra.mxu3 %v2419_v53  ;;  %v2447_v53 = vld [vmem:[%s3166_s3 + $0xcc] sm:$0xf0] }
  0x54   : > { %1239 = vmatpush.bf16.msra.mxu0 %v2394_v54  ;;  %v2445_v54 = vld [vmem:[%s3166_s3 + $0xc4] sm:$0xf] }
  0x55   : > { %1253 = vmatpush.bf16.msra.mxu1 %v2402_v55  ;;  %v2293_v55 = vor.u32 %v2447_v53, %v2292_v52  ;;  %v2253_v52 = vor.u32 %v2436_v47, %v2252_v45  ;;  %v2434_v53 = vld [vmem:[%s3166_s3 + $0x6c] sm:$0xf]  ;;  %v2206_v45 = vld [vmem:[%s3166_s3 + $0x18] sm:$0xf0] }
  0x56   : > { %1267 = vmatpush.bf16.msra.mxu2 %v2410_v56  ;;  %v2294_v56 = vld [vmem:[%s3166_s3 + $0xd0] sm:$0xf0] }
  0x57   : > { %1281 = vmatpush.bf16.msra.mxu3 %v2418_v57  ;;  %v2300_v57 = vld [vmem:[%s3166_s3 + $0xc8] sm:$0xf] }
  0x58   : > { %1240 = vmatpush.bf16.msra.mxu0 %v2393_v58  ;;  %v2448_v58 = vld [vmem:[%s3166_s3 + $0xd4] sm:$0xf0] }
  0x59   : > { %1254 = vmatpush.bf16.msra.mxu1 %v2401_v59  ;;  %v2297_v59 = vor.u32 %v2445_v54, %v2294_v56  ;;  %v2254_v54 = vld [vmem:[%s3166_s3 + $0x78] sm:$0xf0]  ;;  %v2228_v56 = vld [vmem:[%s3166_s3 + $0x40] sm:$0xf] }
  0x5a   : > { %1268 = vmatpush.bf16.msra.mxu2 %v2409_v60  ;;  %v2301_v60 = vor.u32 %v2448_v58, %v2300_v57  ;;  %v2431_v57 = vld [vmem:[%s3166_s3 + $0x4c] sm:$0xf0]  ;;  %v2429_v58 = vld [vmem:[%s3166_s3 + $0x44] sm:$0xf] }
  0x5b   : > { %1282 = vmatpush.bf16.msra.mxu3 %v2417_v61  ;;  %v2446_v61 = vld [vmem:[%s3166_s3 + $0xcc] sm:$0xf] }
  0x5c   : > { %1241 = vmatpush.bf16.msra.mxu0 %v2392_v62  ;;  %v2302_v62 = vld [vmem:[%s3166_s3 + $0xd8] sm:$0xf0] }
  0x5d   : > { %1255 = vmatpush.bf16.msra.mxu1 %v2400_v0 }
  0x5e   : > { %1269 = vmatpush.bf16.msra.mxu2 %v2408_v1 }
  0x5f   : > { %1283 = vmatpush.bf16.msra.mxu3 %v2416_v2  ;;  %v2305_v2 = vor.u32 %v2446_v61, %v2302_v62  ;;  %v2229_v61 = vor.u32 %v2431_v57, %v2228_v56  ;;  %v2230_v62 = vld [vmem:[%s3166_s3 + $0x50] sm:$0xf0] }
  0x60   : > { %1242 = vmatpush.bf16.msra.mxu0 %v2391_v4  ;;  %v2276_v4 = vld [vmem:[%s3166_s3 + $0xa0] sm:$0xf] }
  0x61   : > { %1256 = vmatpush.bf16.msra.mxu1 %v2399_v5  ;;  %v2443_v5 = vld [vmem:[%s3166_s3 + $0xac] sm:$0xf0] }
  0x62   : > { %1270 = vmatpush.bf16.msra.mxu2 %v2407_v7  ;;  %v2441_v7 = vld [vmem:[%s3166_s3 + $0xa4] sm:$0xf] }
  0x63   : > { %1284 = vmatpush.bf16.msra.mxu3 %v2415_v8  ;;  %v2277_v8 = vor.u32 %v2443_v5, %v2276_v4  ;;  %v2432_v4 = vld [vmem:[%s3166_s3 + $0x54] sm:$0xf0]  ;;  %v2233_v5 = vor.u32 %v2429_v58, %v2230_v62 }
  0x64   : > { %1243 = vmatpush.bf16.msra.mxu0 %v2390_v9  ;;  %v2278_v9 = vld [vmem:[%s3166_s3 + $0xb0] sm:$0xf0] }
  0x65   : > { %1257 = vmatpush.bf16.msra.mxu1 %v2398_v10  ;;  %v2284_v10 = vld [vmem:[%s3166_s3 + $0xa8] sm:$0xf] }
  0x66   : > { %1271 = vmatpush.bf16.msra.mxu2 %v2406_v12  ;;  %v2444_v12 = vld [vmem:[%s3166_s3 + $0xb4] sm:$0xf0] }
  0x67   : > { %1285 = vmatpush.bf16.msra.mxu3 %v2414_v13  ;;  %v2281_v13 = vor.u32 %v2441_v7, %v2278_v9  ;;  %v2238_v9 = vld [vmem:[%s3166_s3 + $0x58] sm:$0xf0] }
  0x68   : > { %1244 = vmatpush.bf16.msra.mxu0 %v2389_v14  ;;  %v2285_v14 = vor.u32 %v2444_v12, %v2284_v10  ;;  %v2212_v12 = vld [vmem:[%s3166_s3 + $0x20] sm:$0xf] }
  0x69   : > { %1258 = vmatpush.bf16.msra.mxu1 %v2397_v15  ;;  %v2442_v15 = vld [vmem:[%s3166_s3 + $0xac] sm:$0xf] }
  0x6a   : > { %1272 = vmatpush.bf16.msra.mxu2 %v2405_v25  ;;  %v2289_v19 = vor.u32 %v2442_v15, %v2286_v18  ;;  %v2260_v25 = vld [vmem:[%s3166_s3 + $0x80] sm:$0xf]  ;;  %v2214_v18 = vld [vmem:[%s3166_s3 + $0x30] sm:$0xf0] }
  0x6b   : > { %1286 = vmatpush.bf16.msra.mxu3 %v2413_v26  ;;  %1245 = vmatmul.bf16.vlgmr.msra.gmra.mxu0 %v1031_v11  ;;  %v2439_v26 = vld [vmem:[%s3166_s3 + $0x8c] sm:$0xf0]  ;;  %v2440_v11 = vld [vmem:[%s3166_s3 + $0x94] sm:$0xf0] }
  0x6c   : > { %1259 = vmatmul.bf16.vlgmr.msra.gmra.mxu1 %v1034_v31  ;;  %1506 = vmatpush.bf16.msrb.mxu0 %v2309_v49  ;;  %v2261_v63 = vor.u32 %v2439_v26, %v2260_v25  ;;  %v2265_v31 = vor.u32 %v2437_v30, %v2262_v3  ;;  %v2435_v49 = vld [vmem:[%s3166_s3 + $0x6c] sm:$0xf0]  ;;  %v2428_v25 = vld [vmem:[%s3166_s3 + $0x34] sm:$0xf0]  ;;  %v2222_v3 = vld [vmem:[%s3166_s3 + $0x38] sm:$0xf0] }
  0x6d   : > { %1273 = vmatmul.bf16.vlgmr.msra.gmra.mxu2 %v1037_v32  ;;  %1520 = vmatpush.bf16.msrb.mxu1 %v2313_v42  ;;  %v2269_v32 = vor.u32 %v2440_v11, %v2268_v6  ;;  %v2245_v42 = vor.u32 %v2435_v49, %v2244_v46  ;;  %v2424_v49 = vld [vmem:[%s3166_s3 + $0x14] sm:$0xf0] }
  0x6e   : > { %1287 = vmatmul.bf16.vlgmr.msra.gmra.mxu3 %v1040_v33  ;;  %1534 = vmatpush.bf16.msrb.mxu2 %v2317_v43  ;;  %v2438_v33 = vld [vmem:[%s3166_s3 + $0x8c] sm:$0xf]  ;;  %v2246_v43 = vld [vmem:[%s3166_s3 + $0x70] sm:$0xf0] }
  0x6f   : > { %1548 = vmatpush.bf16.msrb.mxu3 %v2321_v48  ;;  %v2273_v17 = vor.u32 %v2438_v33, %v2270_v16  ;;  %v2249_v48 = vor.u32 %v2433_v34, %v2246_v43  ;;  %v2196_v33 = vld [vmem:[%s3166_s3] sm:$0xf]  ;;  %v2423_v16 = vld [vmem:[%s3166_s3 + $0xc] sm:$0xf0]  ;;  %v2422_v43 = vld [vmem:[%s3166_s3 + $0xc] sm:$0xf] }
  0x70   : > { %1507 = vmatpush.bf16.msrb.mxu0 %v2293_v55  ;;  %v2257_v55 = vor.u32 %v2434_v53, %v2254_v54  ;;  %v2197_v46 = vor.u32 %v2423_v16, %v2196_v33  ;;  %v1575_v33 = vrot.slane %v2584_v22, 1  ;;  %v1576_v16 = vrot.slane %v2590_v24, 1 }
  0x71   : > { %1521 = vmatpush.bf16.msrb.mxu1 %v2297_v59  ;;  %v1581_v22 = vrot.slane %v2613_v35, 1 }
  0x72   : > { %1535 = vmatpush.bf16.msrb.mxu2 %v2301_v60 }
  0x73   : > { %1549 = vmatpush.bf16.msrb.mxu3 %v2305_v2  ;;  %v2236_v2 = vld [vmem:[%s3166_s3 + $0x48] sm:$0xf] }
  0x74   : > { %1508 = vmatpush.bf16.msrb.mxu0 %v2277_v8  ;;  %v2237_v7 = vor.u32 %v2432_v4, %v2236_v2  ;;  %v2430_v8 = vld [vmem:[%s3166_s3 + $0x4c] sm:$0xf] }
  0x75   : > { %1522 = vmatpush.bf16.msrb.mxu1 %v2281_v13  ;;  %v2241_v10 = vor.u32 %v2430_v8, %v2238_v9  ;;  %v2427_v13 = vld [vmem:[%s3166_s3 + $0x2c] sm:$0xf0] }
  0x76   : > { %1536 = vmatpush.bf16.msrb.mxu2 %v2285_v14  ;;  %v2425_v14 = vld [vmem:[%s3166_s3 + $0x24] sm:$0xf]  ;;  %v2213_v15 = vor.u32 %v2427_v13, %v2212_v12 }
  0x77   : > { %1550 = vmatpush.bf16.msrb.mxu3 %v2289_v19  ;;  %v2220_v19 = vld [vmem:[%s3166_s3 + $0x28] sm:$0xf]  ;;  %v2217_v26 = vor.u32 %v2425_v14, %v2214_v18 }
  0x78   : > { %1509 = vmatpush.bf16.msrb.mxu0 %v2261_v63  ;;  %v2221_v30 = vor.u32 %v2428_v25, %v2220_v19  ;;  %v2426_v63 = vld [vmem:[%s3166_s3 + $0x2c] sm:$0xf] }
  0x79   : > { %1523 = vmatpush.bf16.msrb.mxu1 %v2265_v31  ;;  %v2225_v31 = vor.u32 %v2426_v63, %v2222_v3 }
  0x7a   : > { %1537 = vmatpush.bf16.msrb.mxu2 %v2269_v32 }
  0x7b   : > { %1551 = vmatpush.bf16.msrb.mxu3 %v2273_v17  ;;  %v2421_v17 = vld [vmem:[%s3166_s3 + $0x4] sm:$0xf] }
  0x7c   : > { %1510 = vmatpush.bf16.msrb.mxu0 %v2245_v42 }
  0x7d   : > { %1524 = vmatpush.bf16.msrb.mxu1 %v2249_v48 }
  0x7e   : > { %1538 = vmatpush.bf16.msrb.mxu2 %v2253_v52  ;;  %v2209_v52 = vor.u32 %v2422_v43, %v2206_v45 }
  0x7f   : > { %1552 = vmatpush.bf16.msrb.mxu3 %v2257_v55 }
  0x80   : > { %1511 = vmatpush.bf16.msrb.mxu0 %v2229_v61 }
  0x81   : > { %1525 = vmatpush.bf16.msrb.mxu1 %v2233_v5 }
  0x82   : > { %1539 = vmatpush.bf16.msrb.mxu2 %v2237_v7 }
  0x83   : > { %1553 = vmatpush.bf16.msrb.mxu3 %v2241_v10 }
  0x84   : > { %1512 = vmatpush.bf16.msrb.mxu0 %v2213_v15 }
  0x85   : > { %1526 = vmatpush.bf16.msrb.mxu1 %v2217_v26 }
  0x86   : > { %1540 = vmatpush.bf16.msrb.mxu2 %v2221_v30 }
  0x87   : > { %1554 = vmatpush.bf16.msrb.mxu3 %v2225_v31 }
  0x88   : > { %1513 = vmatpush.bf16.msrb.mxu0 %v2197_v46  ;;  %v1579_v46 = vrot.slane %v2599_v27, 1 }
  0x8b   : > { %1555 = vmatpush.bf16.msrb.mxu3 %v2209_v52  ;;  %v1585_v52 = vrot.slane %v2623_v39, 1 }
  0xa8   : > { %v2925_v50 = vpop.f32.mrf.mxu0 }
  0xa9   : > { %v2927_v51 = vpop.f32.mrf.mxu1 }
  0xaa   : > { %v679_v32 = vadd.f32 %v2927_v51, %v2925_v50  ;;  %v2198_v50 = vld [vmem:[%s3166_s3 + $0x10] sm:$0xf0]  ;;  %v2204_v51 = vld [vmem:[%s3166_s3 + $0x8] sm:$0xf] }
  0xab   : > { %v2201_v34 = vor.u32 %v2421_v17, %v2198_v50  ;;  %v2205_v42 = vor.u32 %v2424_v49, %v2204_v51  ;;  %v1578_v17 = vrot.slane %v2587_v23, 1  ;;  %v1582_v23 = vrot.slane %v2620_v38, 1 }
  0xad   : > { %1527 = vmatpush.bf16.msrb.mxu1 %v2201_v34  ;;  %1541 = vmatpush.bf16.msrb.mxu2 %v2205_v42  ;;  %v1577_v34 = vsel %vm1028_vm1, %v1575_v33, %v1576_v16  ;;  %v1580_v43 = vsel %vm1028_vm1, %v1578_v17, %v1579_v46 }
  0xb0   : > { %v2953_v0 = vpop.f32.mrf.mxu2  ;;  %v2981_v20 = vpop.f32.mrf.mxu0 }
  0xb1   : > { %v2955_v1 = vpop.f32.mrf.mxu3  ;;  %v2983_v21 = vpop.f32.mrf.mxu1  ;;  %v693_v53 = vadd.f32 %v2953_v0, %v679_v32 }
  0xb2   : > { %v681_v54 = vadd.f32 %v2983_v21, %v2981_v20 }
  0xb3   : > { %v707_v55 = vadd.f32 %v2955_v1, %v693_v53 }
  0xb8   : > { %v3018_v37 = vpop.f32.mrf.mxu2 }
  0xb9   : > { %v3020_v41 = vpop.f32.mrf.mxu3  ;;  %v695_v58 = vadd.f32 %v3018_v37, %v681_v54 }
  0xbb   : > { %v709_v4 = vadd.f32 %v3020_v41, %v695_v58  ;;  %v2462_v41 = vld [vmem:[%s3165_s2] ss:$0 sm:$0xff]  ;;  %v1583_v58 = vsel %vm1028_vm1, %v1581_v22, %v1582_v23 }
  0xc8   : > { %v916_v59 = vpop.f32.mrf.mxu0 }
  0xc9   : > { %v3046_v60 = vpop.f32.mrf.mxu1  ;;  %v917_v2 = vadd.f32 %v916_v59, %v707_v55  ;;  %v1587_v55 = vrot.slane %v2602_v28, 1 }
  0xcb   : > { %v931_v0 = vadd.f32 %v3046_v60, %v917_v2 }
  0xd0   : > { %v944_v6 = vpop.f32.mrf.mxu2  ;;  %v918_v47 = vpop.f32.mrf.mxu0 }
  0xd1   : > { %v958_v11 = vpop.f32.mrf.mxu3  ;;  %v932_v48 = vpop.f32.mrf.mxu1  ;;  %v919_v9 = vadd.f32 %v918_v47, %v709_v4  ;;  %v945_v12 = vadd.f32 %v944_v6, %v931_v0 }
  0xd3   : > { %v933_v1 = vadd.f32 %v932_v48, %v919_v9  ;;  %v959_v14 = vadd.f32 %v958_v11, %v945_v12  ;;  %v1336_v11 = vld [vmem:[%s3167_s4] sm:$0xf]  ;;  %v1584_v48 = vrot.slane %v2616_v36, 1  ;;  %v1591_v9 = vrot.slane %v2626_v40, 1 }
  0xd4   : > { %v1338_v50 = vperm.slane %v1336_v11, 0  ;;  %v1339_v51 = vperm.slane %v1336_v11, 1  ;;  %v1340_v53 = vperm.slane %v1336_v11, 2  ;;  %v1341_v54 = vperm.slane %v1336_v11, 3 }
  0xd5   : > { %v1586_v38 = vsel %vm1028_vm1, %v1584_v48, %v1585_v52 }
  0xd8   : > { %v946_v56 = vpop.f32.mrf.mxu2 }
  0xd9   : > { %v960_v57 = vpop.f32.mrf.mxu3  ;;  %v947_v15 = vadd.f32 %v946_v56, %v933_v1  ;;  %v1589_v56 = vrot.slane %v2605_v29, 1 }
  0xdb   : > { %v961_v25 = vadd.f32 %v960_v57, %v947_v15  ;;  %v1590_v29 = vsel %vm1028_vm1, %v1579_v46, %v1589_v56 }
  0xe8   : > { %v1246_v61 = vpop.f32.mrf.mxu0 }
  0xe9   : > { %v1260_v62 = vpop.f32.mrf.mxu1 }
  0xea   : > { %v1261_v5 = vadd.f32 %v1260_v62, %v1246_v61  ;;  %v1588_v62 = vsel %vm1028_vm1, %v1576_v16, %v1587_v55 }
  0xf0   : > { %v1274_v7 = vpop.f32.mrf.mxu2  ;;  %v1248_v20 = vpop.f32.mrf.mxu0 }
  0xf1   : > { %v1288_v8 = vpop.f32.mrf.mxu3  ;;  %v1275_v10 = vadd.f32 %v1274_v7, %v1261_v5  ;;  %v1262_v21 = vpop.f32.mrf.mxu1 }
  0xf2   : > { %v1263_v37 = vadd.f32 %v1262_v21, %v1248_v20  ;;  %v1592_v20 = vsel %vm1028_vm1, %v1582_v23, %v1591_v9 }
  0xf3   : > { %v1289_v13 = vadd.f32 %v1288_v8, %v1275_v10  ;;  %v1593_v10 = vrot.slane %v2630_v44, 1 }
  0xf5   : > { %v1293_v19 = vadd.f32 %v1289_v13, %v959_v14  ;;  %v1594_v1 = vsel %vm1028_vm1, %v1585_v52, %v1593_v10 }
  0xf7   : > { %v1299_v30 = vadd.f32 %v2462_v41, %v1293_v19 }
  0xf8   : > { %v1276_v18 = vpop.f32.mrf.mxu2 }
  0xf9   : > { %v1277_v59 = vadd.f32 %v1276_v18, %v1263_v37  ;;  %v1290_v60 = vpop.f32.mrf.mxu3  ;;  %v1301_v6 = vmax.f32 %v1299_v30, 0.0 }
  0xfb   : > { %v1291_v26 = vadd.f32 %v1290_v60, %v1277_v59 }
  0xfd   : > { %v1294_v63 = vadd.f32 %v1291_v26, %v961_v25 }
  0xff   : > { %v1300_v3 = vadd.f32 %v2462_v41, %v1294_v63 }
 0x101   : > { %v1302_v31 = vmax.f32 %v1300_v3, 0.0 }
 0x103   : > { %v1303_v32 = vpack.c.bf16 %v1302_v31, %v1301_v6 }
 0x105   : > { %1514 = vmatmul.bf16.vlgmr.msrb.gmra.mxu0 %v1303_v32  ;;  %1528 = vmatmul.bf16.vlgmr.msrb.gmra.mxu1 %v1303_v32 }
 0x106   : > { %1542 = vmatmul.bf16.vlgmr.msrb.gmra.mxu2 %v1303_v32  ;;  %1556 = vmatmul.bf16.vlgmr.msrb.gmra.mxu3 %v1303_v32 }
 0x182   : > { %v1515_v49 = vpop.f32.mrf.mxu0  ;;  %v1529_v42 = vpop.f32.mrf.mxu1 }
 0x183   : > { %v1516_v45 = vadd.f32 %v1515_v49, %v1338_v50  ;;  %v1530_v47 = vadd.f32 %v1529_v42, %v1339_v51 }
 0x185   : > { %v1603_v24 = vadd.f32 %v1577_v34, %v1516_v45  ;;  %v1604_v27 = vadd.f32 %v1580_v43, %v1530_v47 }
 0x187   : > { %1611 = vst [vmem:[%s3136_s29] sm:$0xff] %v1603_v24 }
 0x188   : > { %1612 = vst [vmem:[%s3136_s29 + $0x8] sm:$0xff] %v1604_v27 }
 0x189   : > { %v1543_v57 = vpop.f32.mrf.mxu2  ;;  %v1557_v35 = vpop.f32.mrf.mxu3 }
 0x18a   : > { %v1544_v61 = vadd.f32 %v1543_v57, %v1340_v53  ;;  %v1558_v36 = vadd.f32 %v1557_v35, %v1341_v54  ;;  %v1517_v39 = vpop.f32.mrf.mxu0  ;;  %v1531_v28 = vpop.f32.mrf.mxu1 }
 0x18b   : > { %v1518_v2 = vadd.f32 %v1517_v39, %v1338_v50  ;;  %v1532_v4 = vadd.f32 %v1531_v28, %v1339_v51 }
 0x18c   : > { %v1605_v5 = vadd.f32 %v1583_v58, %v1544_v61  ;;  %v1606_v0 = vadd.f32 %v1586_v38, %v1558_v36 }
 0x18d   : > { %v1607_v7 = vadd.f32 %v1588_v62, %v1518_v2  ;;  %v1608_v8 = vadd.f32 %v1590_v29, %v1532_v4 }
 0x18e   : > { %1613 = vst [vmem:[%s3136_s29 + $0x10] sm:$0xff] %v1605_v5 }
 0x18f   : > { %1614 = vst [vmem:[%s3136_s29 + $0x18] sm:$0xff] %v1606_v0 }
 0x190   : > { %1615 = vst [vmem:[%s3136_s29 + $0x20] sm:$0xff] %v1607_v7 }
 0x191   : > { %1616 = vst [vmem:[%s3136_s29 + $0x28] sm:$0xff] %v1608_v8  ;;  %v1545_v12 = vpop.f32.mrf.mxu2  ;;  %v1559_v21 = vpop.f32.mrf.mxu3 }
 0x192   : > { %v1546_v13 = vadd.f32 %v1545_v12, %v1340_v53  ;;  %v1560_v14 = vadd.f32 %v1559_v21, %v1341_v54 }
 0x194   : > { %v1609_v15 = vadd.f32 %v1592_v20, %v1546_v13  ;;  %v1610_v37 = vadd.f32 %v1594_v1, %v1560_v14 }
 0x196   : > { %1617 = vst [vmem:[%s3136_s29 + $0x30] sm:$0xff] %v1609_v15 }
 0x197   : > { %1618 = vst [vmem:[%s3136_s29 + $0x38] sm:$0xff] %v1610_v37 }
 0x198 PF: > { %s15_s18 = sadd.s32 1, %s2469_s18  }
 0x199   : > { %p12_p4 = scmp.ge.s32.totalorder %s15_s18, 4  }
 0x19b   :  { %14 = sbr.rel (!%p12_p4) target bundleno = 1 (0x1), region = 72 }

</bundles_post_ra>
